<compile_context>
chip_gen: v5e
topology: v5e:2x2
jax: 0.10.0
libtpu: 0.0.40
codegen_flags: <defaults>
</compile_context>

<pallas_src>
import functools

import jax
import jax.numpy as jnp
import numpy as np
from jax.experimental import pallas as pl
from jax.experimental.pallas import tpu as pltpu

NEG_SLOPE = 0.2
PIXELNORM_EPS = 1e-8


def _round_up(x, m):
    return ((x + m - 1) // m) * m


def _cdiv(a, b):
    return (a + b - 1) // b


def _leaky_relu(h):
    # max(h, 0.2*h) == LeakyReLU(0.2); one VALU max instead of compare+select.
    return jnp.maximum(h, NEG_SLOPE * h)


# ---------------------------------------------------------------------------
# Kernel 1: VMEM-resident weights (single copy), for multi-step batch grids.
# ---------------------------------------------------------------------------
def style_mapping_kernel(x_ref, w_ref, b_ref, o_ref, *, num_fcs):
    x = x_ref[...].astype(jnp.float32)                         # (TB, D) f32
    mean_sq = jnp.mean(x * x, axis=-1, keepdims=True)          # (TB, 1)
    h = x * jax.lax.rsqrt(mean_sq + PIXELNORM_EPS)             # PixelNorm
    for i in range(num_fcs):                                   # static unroll
        acc = jnp.dot(h.astype(jnp.bfloat16), w_ref[i],
                      preferred_element_type=jnp.float32)      # bf16 MXU, f32 acc
        h = _leaky_relu(acc + b_ref[i])
    o_ref[...] = h.astype(o_ref.dtype)


# ---------------------------------------------------------------------------
# Kernel 2: small-batch / latency path.  Weights stay in HBM and are streamed
# per layer with a manual double buffer, so the first matmul only waits for
# 1/num_fcs of the weight bytes and later DMAs hide under the matmuls.
# ---------------------------------------------------------------------------
def style_mapping_stream_kernel(x_ref, w_hbm, b_ref, o_ref, wbuf, sem, *, num_fcs):
    def start(i, slot):
        pltpu.make_async_copy(w_hbm.at[i], wbuf.at[slot], sem.at[slot]).start()

    def wait(i, slot):
        pltpu.make_async_copy(w_hbm.at[i], wbuf.at[slot], sem.at[slot]).wait()

    start(0, 0)                                                # prime layer 0
    x = x_ref[...].astype(jnp.float32)
    mean_sq = jnp.mean(x * x, axis=-1, keepdims=True)
    h = x * jax.lax.rsqrt(mean_sq + PIXELNORM_EPS)             # PixelNorm
    for i in range(num_fcs):                                   # static unroll
        slot = i & 1
        wait(i, slot)
        if i + 1 < num_fcs:
            start(i + 1, 1 - slot)                             # prefetch next layer
        acc = jnp.dot(h.astype(jnp.bfloat16), wbuf[slot],
                      preferred_element_type=jnp.float32)
        h = _leaky_relu(acc + b_ref[i])
    o_ref[...] = h.astype(o_ref.dtype)


def style_mapping_network(x, w_eff, b_eff, *, tile_b=512, use_weight_streaming=None):
    """x: any leading shape, flattened to (-1, len_latent) like the PyTorch view."""
    L, D_in, D_out = w_eff.shape
    x2d = x.reshape(-1, D_in)                                  # view(-1, len_latent)
    B = x2d.shape[0]

    # MXU-filling batch tile, clamped for tiny batches, multiple of 8.
    tile_b = max(8, min(int(tile_b), _round_up(B, 8)))
    tile_b = _round_up(tile_b, 8)
    # Guarantee >= 2 grid steps when the batch allows it so v7x's second
    # TensorCore gets a shard of the "parallel" batch axis.
    if _cdiv(B, tile_b) < 2 and B > 8:
        tile_b = _round_up(_cdiv(B, 2), 8)
    steps = _cdiv(B, tile_b)                                   # ragged last tile OK

    if use_weight_streaming is None:
        use_weight_streaming = steps <= 2                      # latency regime

    def _compiler_params(user_bytes):
        # Headroom over user buffers; v5e's default scoped VMEM is only 16 MiB.
        limit = max(32 << 20, int(1.5 * user_bytes) + (8 << 20))
        limit = min(limit, 64 << 20)                           # fits v7x physical VMEM
        return pltpu.CompilerParams(
            dimension_semantics=("parallel",),
            vmem_limit_bytes=limit)

    io_bytes = 2 * tile_b * (D_in + D_out) * x2d.dtype.itemsize     # double-buffered I/O
    b_bytes = L * D_out * b_eff.dtype.itemsize

    out_shape = jax.ShapeDtypeStruct((B, D_out), x2d.dtype)

    if use_weight_streaming:
        w_bytes = 2 * D_in * D_out * w_eff.dtype.itemsize           # 2-slot stream buffer
        kernel = functools.partial(style_mapping_stream_kernel, num_fcs=L)
        return pl.pallas_call(
            kernel,
            out_shape=out_shape,
            grid_spec=pltpu.PrefetchScalarGridSpec(
                num_scalar_prefetch=0,
                grid=(steps,),
                in_specs=[
                    pl.BlockSpec((tile_b, D_in), lambda i: (i, 0)),
                    pl.BlockSpec(memory_space=pl.ANY),               # weights stay in HBM
                    pl.BlockSpec((L, 1, D_out), lambda i: (0, 0, 0),
                                 pipeline_mode=pl.Buffered(1)),
                ],
                out_specs=pl.BlockSpec((tile_b, D_out), lambda i: (i, 0)),
                scratch_shapes=[
                    pltpu.VMEM((2, D_in, D_out), w_eff.dtype),        # weight double buffer
                    pltpu.SemaphoreType.DMA((2,)),
                ],
            ),
            compiler_params=_compiler_params(io_bytes + w_bytes + b_bytes),
        )(x2d, w_eff, b_eff)

    w_bytes = L * D_in * D_out * w_eff.dtype.itemsize                # resident, single copy
    kernel = functools.partial(style_mapping_kernel, num_fcs=L)
    return pl.pallas_call(
        kernel,
        out_shape=out_shape,
        grid_spec=pltpu.PrefetchScalarGridSpec(
            num_scalar_prefetch=0,
            grid=(steps,),
            in_specs=[
                pl.BlockSpec((tile_b, D_in), lambda i: (i, 0)),
                # Grid-invariant weight / bias stacks: keep a single VMEM copy.
                pl.BlockSpec((L, D_in, D_out), lambda i: (0, 0, 0),
                             pipeline_mode=pl.Buffered(1)),
                pl.BlockSpec((L, 1, D_out), lambda i: (0, 0, 0),
                             pipeline_mode=pl.Buffered(1)),
            ],
            out_specs=pl.BlockSpec((tile_b, D_out), lambda i: (i, 0)),
        ),
        compiler_params=_compiler_params(io_bytes + w_bytes + b_bytes),
    )(x2d, w_eff, b_eff)


def init_effective_params(key, len_latent, len_dlatent, num_fcs,
                          lrmul=0.01, gain_sq_base=2.0):
    """Deterministic synthetic params matching LinearEx(He, StyleGAN, eq-lr, lrmul).

    Effective weight = stored * he_std * lrmul (f32, then bf16 for the MXU).
    Effective bias = stored * lrmul (kept f32).
    """
    # TODO(synk): stacked (L, Din, Dout) layout assumes equal layer widths
    # (the default StyleGAN config, len_latent == len_dlatent); unequal widths
    # would need per-layer weight specs.
    assert len_latent == len_dlatent, "stacked layout needs len_latent == len_dlatent"
    dims = np.linspace(len_latent, len_dlatent, num_fcs + 1).astype(np.int64)
    ws, bs = [], []
    for n in range(num_fcs):
        nin, nout = int(dims[n]), int(dims[n + 1])
        key, wk = jax.random.split(key)
        he_std = (gain_sq_base / nin) ** 0.5
        # equalized lr: stored weight ~ N(0,1)/lrmul, runtime mult = he_std*lrmul
        w_stored = jax.random.normal(wk, (nout, nin), jnp.float32) / lrmul
        w_eff = (w_stored * (he_std * lrmul)).T                # (nin, nout), f32
        b_stored = jnp.zeros((nout,), jnp.float32)
        b_eff = (b_stored * lrmul)[None, :]                    # (1, nout), f32
        ws.append(w_eff)
        bs.append(b_eff)
    w_eff = jnp.stack(ws).astype(jnp.bfloat16)                 # (L, Din, Dout) bf16
    b_eff = jnp.stack(bs)                                      # (L, 1,   Dout) f32
    return w_eff, b_eff


def reference_forward(x, w_eff_bf16, b_eff):
    """Pure-JAX reference with identical numerics (bf16 matmul inputs, f32 acc)."""
    D = w_eff_bf16.shape[1]
    h = x.reshape(-1, D).astype(jnp.float32)
    h = h * jax.lax.rsqrt(jnp.mean(h * h, axis=-1, keepdims=True) + PIXELNORM_EPS)
    for i in range(w_eff_bf16.shape[0]):
        acc = jnp.dot(h.astype(jnp.bfloat16), w_eff_bf16[i],
                      preferred_element_type=jnp.float32)
        h = acc + b_eff[i]
        h = jnp.maximum(h, NEG_SLOPE * h)
    return h


if __name__ == "__main__":
    LEN_LATENT = 128   # small stand-in for the default 512 (len_latent == len_dlatent)
    NUM_FCS = 8

    key = jax.random.PRNGKey(0)
    kx, kp = jax.random.split(key)
    # Extra leading dims are flattened to (-1, len_latent) like preprocess_z.
    # B = 40 deliberately does NOT divide the tile -> exercises the ragged path.
    x = jax.random.normal(kx, (2, 20, LEN_LATENT), dtype=jnp.float32)  # -> (40, 128)

    w_eff, b_eff = init_effective_params(kp, LEN_LATENT, LEN_LATENT, NUM_FCS)

    ref = jax.block_until_ready(reference_forward(x, w_eff, b_eff))

    # Path A: multi-step grid with a ragged last tile (tile 16 -> grid=3, last
    # tile half out-of-bounds), VMEM-resident weight stack.
    out_a = jax.block_until_ready(
        style_mapping_network(x, w_eff, b_eff, tile_b=16, use_weight_streaming=False))

    # Path B: default tiling -> clamped to 2 grid steps (megacore-friendly)
    # -> per-layer weight streaming (manual double-buffered DMA).
    out_b = jax.block_until_ready(style_mapping_network(x, w_eff, b_eff))

    for out in (out_a, out_b):
        assert out.shape == (40, LEN_LATENT), out.shape
        assert bool(jnp.all(jnp.isfinite(out))), "non-finite output"
        assert jnp.allclose(out, ref, rtol=2e-3, atol=2e-3), "mismatch vs reference"

    print("KERNEL_OK")
</pallas_src>

<mosaic_0001>
module attributes {stable_mosaic.version = 11 : i64} {
  func.func @style_mapping_kernel(%arg0: i32, %arg1: memref<16x128xf32, #tpu.memory_space<vmem>>, %arg2: memref<8x128x128xbf16, #tpu.memory_space<vmem>>, %arg3: memref<8x1x128xf32, #tpu.memory_space<vmem>>, %arg4: memref<16x128xf32, #tpu.memory_space<vmem>>) attributes {dimension_semantics = [#tpu.dimension_semantics<parallel>], iteration_bounds = array<i64: 3>, scalar_prefetch = 0 : i64, scratch_operands = 0 : i64, tpu.core_type = #tpu.core_type<tc>, window_params = [{transform_indices = @transform_0, window_bounds = array<i64: 16, 128>}, {pipeline_mode = #tpu.pipeline_mode<synchronous>, transform_indices = @transform_1, window_bounds = array<i64: 8, 128, 128>}, {pipeline_mode = #tpu.pipeline_mode<synchronous>, transform_indices = @transform_2, window_bounds = array<i64: 8, 1, 128>}, {transform_indices = @transform_3, window_bounds = array<i64: 16, 128>}]} {
    %c0 = arith.constant 0 : index
    %c0_0 = arith.constant 0 : index
    %0 = vector.load %arg1[%c0, %c0_0] : memref<16x128xf32, #tpu.memory_space<vmem>>, vector<16x128xf32>
    %1 = arith.mulf %0, %0 : vector<16x128xf32>
    %cst = arith.constant dense<0.000000e+00> : vector<16xf32>
    %2 = vector.multi_reduction <add>, %1, %cst [1] : vector<16x128xf32> to vector<16xf32>
    %3 = vector.shape_cast %2 : vector<16xf32> to vector<16x1xf32>
    %cst_1 = arith.constant 1.280000e+02 : f32
    %4 = vector.broadcast %cst_1 : f32 to vector<16x1xf32>
    %5 = arith.divf %3, %4 : vector<16x1xf32>
    %cst_2 = arith.constant 9.99999993E-9 : f32
    %6 = vector.broadcast %cst_2 : f32 to vector<16x1xf32>
    %7 = arith.addf %5, %6 : vector<16x1xf32>
    %8 = math.rsqrt %7 : vector<16x1xf32>
    %9 = vector.broadcast %8 : vector<16x1xf32> to vector<16x128xf32>
    %10 = arith.mulf %0, %9 : vector<16x128xf32>
    %11 = arith.truncf %10 : vector<16x128xf32> to vector<16x128xbf16>
    %c0_3 = arith.constant 0 : index
    %c0_4 = arith.constant 0 : index
    %c0_5 = arith.constant 0 : index
    %12 = vector.load %arg2[%c0_3, %c0_4, %c0_5] : memref<8x128x128xbf16, #tpu.memory_space<vmem>>, vector<1x128x128xbf16>
    %13 = vector.shape_cast %12 : vector<1x128x128xbf16> to vector<128x128xbf16>
    %cst_6 = arith.constant dense<0.000000e+00> : vector<16x128xf32>
    %14 = tpu.matmul %11, %13, %cst_6 {dimension_numbers = #tpu.dot_dimension_numbers<[1], [0], [0], [1], [0, 0, 1, 1], [], []>} : vector<16x128xbf16>, vector<128x128xbf16>, vector<16x128xf32> -> vector<16x128xf32>
    %c0_7 = arith.constant 0 : index
    %c0_8 = arith.constant 0 : index
    %c0_9 = arith.constant 0 : index
    %15 = vector.load %arg3[%c0_7, %c0_8, %c0_9] : memref<8x1x128xf32, #tpu.memory_space<vmem>>, vector<1x1x128xf32>
    %16 = vector.shape_cast %15 : vector<1x1x128xf32> to vector<1x128xf32>
    %17 = vector.broadcast %16 : vector<1x128xf32> to vector<16x128xf32>
    %18 = arith.addf %14, %17 : vector<16x128xf32>
    %cst_10 = arith.constant 2.000000e-01 : f32
    %19 = vector.broadcast %cst_10 : f32 to vector<16x128xf32>
    %20 = arith.mulf %19, %18 : vector<16x128xf32>
    %21 = arith.maximumf %18, %20 : vector<16x128xf32>
    %22 = arith.truncf %21 : vector<16x128xf32> to vector<16x128xbf16>
    %c1 = arith.constant 1 : index
    %c0_11 = arith.constant 0 : index
    %c0_12 = arith.constant 0 : index
    %23 = vector.load %arg2[%c1, %c0_11, %c0_12] : memref<8x128x128xbf16, #tpu.memory_space<vmem>>, vector<1x128x128xbf16>
    %24 = vector.shape_cast %23 : vector<1x128x128xbf16> to vector<128x128xbf16>
    %cst_13 = arith.constant dense<0.000000e+00> : vector<16x128xf32>
    %25 = tpu.matmul %22, %24, %cst_13 {dimension_numbers = #tpu.dot_dimension_numbers<[1], [0], [0], [1], [0, 0, 1, 1], [], []>} : vector<16x128xbf16>, vector<128x128xbf16>, vector<16x128xf32> -> vector<16x128xf32>
    %c1_14 = arith.constant 1 : index
    %c0_15 = arith.constant 0 : index
    %c0_16 = arith.constant 0 : index
    %26 = vector.load %arg3[%c1_14, %c0_15, %c0_16] : memref<8x1x128xf32, #tpu.memory_space<vmem>>, vector<1x1x128xf32>
    %27 = vector.shape_cast %26 : vector<1x1x128xf32> to vector<1x128xf32>
    %28 = vector.broadcast %27 : vector<1x128xf32> to vector<16x128xf32>
    %29 = arith.addf %25, %28 : vector<16x128xf32>
    %cst_17 = arith.constant 2.000000e-01 : f32
    %30 = vector.broadcast %cst_17 : f32 to vector<16x128xf32>
    %31 = arith.mulf %30, %29 : vector<16x128xf32>
    %32 = arith.maximumf %29, %31 : vector<16x128xf32>
    %33 = arith.truncf %32 : vector<16x128xf32> to vector<16x128xbf16>
    %c2 = arith.constant 2 : index
    %c0_18 = arith.constant 0 : index
    %c0_19 = arith.constant 0 : index
    %34 = vector.load %arg2[%c2, %c0_18, %c0_19] : memref<8x128x128xbf16, #tpu.memory_space<vmem>>, vector<1x128x128xbf16>
    %35 = vector.shape_cast %34 : vector<1x128x128xbf16> to vector<128x128xbf16>
    %cst_20 = arith.constant dense<0.000000e+00> : vector<16x128xf32>
    %36 = tpu.matmul %33, %35, %cst_20 {dimension_numbers = #tpu.dot_dimension_numbers<[1], [0], [0], [1], [0, 0, 1, 1], [], []>} : vector<16x128xbf16>, vector<128x128xbf16>, vector<16x128xf32> -> vector<16x128xf32>
    %c2_21 = arith.constant 2 : index
    %c0_22 = arith.constant 0 : index
    %c0_23 = arith.constant 0 : index
    %37 = vector.load %arg3[%c2_21, %c0_22, %c0_23] : memref<8x1x128xf32, #tpu.memory_space<vmem>>, vector<1x1x128xf32>
    %38 = vector.shape_cast %37 : vector<1x1x128xf32> to vector<1x128xf32>
    %39 = vector.broadcast %38 : vector<1x128xf32> to vector<16x128xf32>
    %40 = arith.addf %36, %39 : vector<16x128xf32>
    %cst_24 = arith.constant 2.000000e-01 : f32
    %41 = vector.broadcast %cst_24 : f32 to vector<16x128xf32>
    %42 = arith.mulf %41, %40 : vector<16x128xf32>
    %43 = arith.maximumf %40, %42 : vector<16x128xf32>
    %44 = arith.truncf %43 : vector<16x128xf32> to vector<16x128xbf16>
    %c3 = arith.constant 3 : index
    %c0_25 = arith.constant 0 : index
    %c0_26 = arith.constant 0 : index
    %45 = vector.load %arg2[%c3, %c0_25, %c0_26] : memref<8x128x128xbf16, #tpu.memory_space<vmem>>, vector<1x128x128xbf16>
    %46 = vector.shape_cast %45 : vector<1x128x128xbf16> to vector<128x128xbf16>
    %cst_27 = arith.constant dense<0.000000e+00> : vector<16x128xf32>
    %47 = tpu.matmul %44, %46, %cst_27 {dimension_numbers = #tpu.dot_dimension_numbers<[1], [0], [0], [1], [0, 0, 1, 1], [], []>} : vector<16x128xbf16>, vector<128x128xbf16>, vector<16x128xf32> -> vector<16x128xf32>
    %c3_28 = arith.constant 3 : index
    %c0_29 = arith.constant 0 : index
    %c0_30 = arith.constant 0 : index
    %48 = vector.load %arg3[%c3_28, %c0_29, %c0_30] : memref<8x1x128xf32, #tpu.memory_space<vmem>>, vector<1x1x128xf32>
    %49 = vector.shape_cast %48 : vector<1x1x128xf32> to vector<1x128xf32>
    %50 = vector.broadcast %49 : vector<1x128xf32> to vector<16x128xf32>
    %51 = arith.addf %47, %50 : vector<16x128xf32>
    %cst_31 = arith.constant 2.000000e-01 : f32
    %52 = vector.broadcast %cst_31 : f32 to vector<16x128xf32>
    %53 = arith.mulf %52, %51 : vector<16x128xf32>
    %54 = arith.maximumf %51, %53 : vector<16x128xf32>
    %55 = arith.truncf %54 : vector<16x128xf32> to vector<16x128xbf16>
    %c4 = arith.constant 4 : index
    %c0_32 = arith.constant 0 : index
    %c0_33 = arith.constant 0 : index
    %56 = vector.load %arg2[%c4, %c0_32, %c0_33] : memref<8x128x128xbf16, #tpu.memory_space<vmem>>, vector<1x128x128xbf16>
    %57 = vector.shape_cast %56 : vector<1x128x128xbf16> to vector<128x128xbf16>
    %cst_34 = arith.constant dense<0.000000e+00> : vector<16x128xf32>
    %58 = tpu.matmul %55, %57, %cst_34 {dimension_numbers = #tpu.dot_dimension_numbers<[1], [0], [0], [1], [0, 0, 1, 1], [], []>} : vector<16x128xbf16>, vector<128x128xbf16>, vector<16x128xf32> -> vector<16x128xf32>
    %c4_35 = arith.constant 4 : index
    %c0_36 = arith.constant 0 : index
    %c0_37 = arith.constant 0 : index
    %59 = vector.load %arg3[%c4_35, %c0_36, %c0_37] : memref<8x1x128xf32, #tpu.memory_space<vmem>>, vector<1x1x128xf32>
    %60 = vector.shape_cast %59 : vector<1x1x128xf32> to vector<1x128xf32>
    %61 = vector.broadcast %60 : vector<1x128xf32> to vector<16x128xf32>
    %62 = arith.addf %58, %61 : vector<16x128xf32>
    %cst_38 = arith.constant 2.000000e-01 : f32
    %63 = vector.broadcast %cst_38 : f32 to vector<16x128xf32>
    %64 = arith.mulf %63, %62 : vector<16x128xf32>
    %65 = arith.maximumf %62, %64 : vector<16x128xf32>
    %66 = arith.truncf %65 : vector<16x128xf32> to vector<16x128xbf16>
    %c5 = arith.constant 5 : index
    %c0_39 = arith.constant 0 : index
    %c0_40 = arith.constant 0 : index
    %67 = vector.load %arg2[%c5, %c0_39, %c0_40] : memref<8x128x128xbf16, #tpu.memory_space<vmem>>, vector<1x128x128xbf16>
    %68 = vector.shape_cast %67 : vector<1x128x128xbf16> to vector<128x128xbf16>
    %cst_41 = arith.constant dense<0.000000e+00> : vector<16x128xf32>
    %69 = tpu.matmul %66, %68, %cst_41 {dimension_numbers = #tpu.dot_dimension_numbers<[1], [0], [0], [1], [0, 0, 1, 1], [], []>} : vector<16x128xbf16>, vector<128x128xbf16>, vector<16x128xf32> -> vector<16x128xf32>
    %c5_42 = arith.constant 5 : index
    %c0_43 = arith.constant 0 : index
    %c0_44 = arith.constant 0 : index
    %70 = vector.load %arg3[%c5_42, %c0_43, %c0_44] : memref<8x1x128xf32, #tpu.memory_space<vmem>>, vector<1x1x128xf32>
    %71 = vector.shape_cast %70 : vector<1x1x128xf32> to vector<1x128xf32>
    %72 = vector.broadcast %71 : vector<1x128xf32> to vector<16x128xf32>
    %73 = arith.addf %69, %72 : vector<16x128xf32>
    %cst_45 = arith.constant 2.000000e-01 : f32
    %74 = vector.broadcast %cst_45 : f32 to vector<16x128xf32>
    %75 = arith.mulf %74, %73 : vector<16x128xf32>
    %76 = arith.maximumf %73, %75 : vector<16x128xf32>
    %77 = arith.truncf %76 : vector<16x128xf32> to vector<16x128xbf16>
    %c6 = arith.constant 6 : index
    %c0_46 = arith.constant 0 : index
    %c0_47 = arith.constant 0 : index
    %78 = vector.load %arg2[%c6, %c0_46, %c0_47] : memref<8x128x128xbf16, #tpu.memory_space<vmem>>, vector<1x128x128xbf16>
    %79 = vector.shape_cast %78 : vector<1x128x128xbf16> to vector<128x128xbf16>
    %cst_48 = arith.constant dense<0.000000e+00> : vector<16x128xf32>
    %80 = tpu.matmul %77, %79, %cst_48 {dimension_numbers = #tpu.dot_dimension_numbers<[1], [0], [0], [1], [0, 0, 1, 1], [], []>} : vector<16x128xbf16>, vector<128x128xbf16>, vector<16x128xf32> -> vector<16x128xf32>
    %c6_49 = arith.constant 6 : index
    %c0_50 = arith.constant 0 : index
    %c0_51 = arith.constant 0 : index
    %81 = vector.load %arg3[%c6_49, %c0_50, %c0_51] : memref<8x1x128xf32, #tpu.memory_space<vmem>>, vector<1x1x128xf32>
    %82 = vector.shape_cast %81 : vector<1x1x128xf32> to vector<1x128xf32>
    %83 = vector.broadcast %82 : vector<1x128xf32> to vector<16x128xf32>
    %84 = arith.addf %80, %83 : vector<16x128xf32>
    %cst_52 = arith.constant 2.000000e-01 : f32
    %85 = vector.broadcast %cst_52 : f32 to vector<16x128xf32>
    %86 = arith.mulf %85, %84 : vector<16x128xf32>
    %87 = arith.maximumf %84, %86 : vector<16x128xf32>
    %88 = arith.truncf %87 : vector<16x128xf32> to vector<16x128xbf16>
    %c7 = arith.constant 7 : index
    %c0_53 = arith.constant 0 : index
    %c0_54 = arith.constant 0 : index
    %89 = vector.load %arg2[%c7, %c0_53, %c0_54] : memref<8x128x128xbf16, #tpu.memory_space<vmem>>, vector<1x128x128xbf16>
    %90 = vector.shape_cast %89 : vector<1x128x128xbf16> to vector<128x128xbf16>
    %cst_55 = arith.constant dense<0.000000e+00> : vector<16x128xf32>
    %91 = tpu.matmul %88, %90, %cst_55 {dimension_numbers = #tpu.dot_dimension_numbers<[1], [0], [0], [1], [0, 0, 1, 1], [], []>} : vector<16x128xbf16>, vector<128x128xbf16>, vector<16x128xf32> -> vector<16x128xf32>
    %c7_56 = arith.constant 7 : index
    %c0_57 = arith.constant 0 : index
    %c0_58 = arith.constant 0 : index
    %92 = vector.load %arg3[%c7_56, %c0_57, %c0_58] : memref<8x1x128xf32, #tpu.memory_space<vmem>>, vector<1x1x128xf32>
    %93 = vector.shape_cast %92 : vector<1x1x128xf32> to vector<1x128xf32>
    %94 = vector.broadcast %93 : vector<1x128xf32> to vector<16x128xf32>
    %95 = arith.addf %91, %94 : vector<16x128xf32>
    %cst_59 = arith.constant 2.000000e-01 : f32
    %96 = vector.broadcast %cst_59 : f32 to vector<16x128xf32>
    %97 = arith.mulf %96, %95 : vector<16x128xf32>
    %98 = arith.maximumf %95, %97 : vector<16x128xf32>
    %c0_60 = arith.constant 0 : index
    %c0_61 = arith.constant 0 : index
    %99 = vector.load %arg4[%c0_60, %c0_61] : memref<16x128xf32, #tpu.memory_space<vmem>>, vector<16x128xf32>
    tpu.vector_store %arg4[%c0_60, %c0_61], %98 {strides = array<i32>} : memref<16x128xf32, #tpu.memory_space<vmem>>, vector<16x128xf32>,
    return
  }
  func.func @transform_0(%arg0: i32) -> (i32, i32) {
    %c0_i32 = arith.constant 0 : i32
    %c0_i32_0 = arith.constant 0 : i32
    return %arg0, %c0_i32 : i32, i32
  }
  func.func @transform_1(%arg0: i32) -> (i32, i32, i32) {
    %c0_i32 = arith.constant 0 : i32
    %c0_i32_0 = arith.constant 0 : i32
    %c0_i32_1 = arith.constant 0 : i32
    %c0_i32_2 = arith.constant 0 : i32
    return %c0_i32, %c0_i32_0, %c0_i32_1 : i32, i32, i32
  }
  func.func @transform_2(%arg0: i32) -> (i32, i32, i32) {
    %c0_i32 = arith.constant 0 : i32
    %c0_i32_0 = arith.constant 0 : i32
    %c0_i32_1 = arith.constant 0 : i32
    %c0_i32_2 = arith.constant 0 : i32
    return %c0_i32, %c0_i32_0, %c0_i32_1 : i32, i32, i32
  }
  func.func @transform_3(%arg0: i32) -> (i32, i32) {
    %c0_i32 = arith.constant 0 : i32
    %c0_i32_0 = arith.constant 0 : i32
    return %arg0, %c0_i32 : i32, i32
  }
}

</mosaic_0001>

<bundles_post_ra>
// kernel: tpu_custom_call.1
= control target key start
LH: loop header
LB: loop body
LE: loop exit
PB: predicated region body
PF: predicated region fallthrough
CT: control target
= control target key end

     0   :  { %8 = vsyncpa [#allocation3], 0  ;;  %s1967_s0 = inlined_call_operand.hbm [shape: f32[40,128], index: 0, kind: input, shape index: {}]   ;;  %s1968_s1 = inlined_call_operand.hbm [shape: bf16[8,128,128], index: 1, kind: input, shape index: {}]   ;;  %s1969_s2 = inlined_call_operand.hbm [shape: f32[8,1,128], index: 2, kind: input, shape index: {}]   ;;  %s1970_s3 = inlined_call_operand.hbm [shape: f32[40,128], index: 3, kind: output, shape index: {}]  }
   0x1   :  { %10 = vsyncpa [#allocation3 + $0x1], 0 }
   0x2   :  { %11 = vsyncpa [#allocation6], 0 }
   0x3   :  { %12 = vsyncpa [#allocation4], 0 }
   0x4   :  { %14 = vsyncpa [#allocation4 + $0x1], 0  ;;  %s1755_s12 = smov 0   ;;  %s1757_s13 = smov 0  }
   0x5   :  { %s1759_s14 = smov 0   ;;  %s1761_s15 = smov 0  }
   0x6 LB: > { %s1776_s16 = sadd.s32 4294967295, %s1720_s15   ;;  %s1109_s17 = sadd.s32 4294967294, %s1720_s15   ;;  %s1720_s15 = sphi %s1761_s15, %s1985_s15   ;;  %s1716_s14 = sphi %s1759_s14, %s1984_s14   ;;  %s1712_s13 = sphi %s1757_s13, %s1983_s13   ;;  %s1708_s12 = sphi %s1755_s12, %s1982_s12  }
   0x7   : > { %s1780_s18 = sadd.s32 1, %s1720_s15   ;;  %s27_s19 = sadd.s32 1, %s1716_s14 }
   0x8   : > { %s24_s20 = ssub.s32 %s1720_s15, %s1780_s18  ;;  %p34_p0 = scmp.ne.s32.totalorder %s1716_s14, %s1712_s13 }
   0x9   : > { %p25_p1 = scmp.eq.s32.totalorder %s24_s20, 0  ;;  %p35_p2 = scmp.eq.s32.totalorder %s1720_s15, 0 }
   0xa   : > { %p40_p3 = scmp.ne.s32.totalorder %s1712_s13, %s1708_s12  ;;  %p1971_p4 = scmp.eq.s32.totalorder %s1776_s16, 0 }
   0xb   : > { %s1792_s21 = scalar_select %p25_p1, %s1716_s14, %s27_s19  }
   0xc   : > { %p1794_p5 = por %p35_p2, %p34_p0  ;;  %p1800_p6 = por %p1971_p4, %p40_p3 }
   0xd   : > { %p106_p7 = scmp.eq.s32.totalorder %s1776_s16, 2  ;;  %p112_p8 = scmp.eq.s32.totalorder %s1109_s17, 2 }
   0xe   : > { %p1110_p9 = scmp.ge.s32.totalorder %s1720_s15, 1  ;;  %p119_p10 = scmp.lt.s32.totalorder %s1720_s15, 4 }
   0xf   : > { %p1807_p11 = por %p106_p7, %p34_p0  ;;  %p1811_p12 = por %p112_p8, %p40_p3 }
  0x10   : > { %p1815_p13 = pnand %p1110_p9, %p119_p10  ;;  %s130_s29 = sshll.u32 %s1968_s1, 4  ;;  %s131_s29 = int_to_ptr.hbm [resolvable:$true] %s130_s29 }
  0x11   : > { %s1975_s25 = scalar_select %p1811_p12, 1, 0 }
  0x12   : > { %p1467_p1 = pneg %p1815_p13  ;;  %s1722_s30 = smov [#allocation5]  }
  0x13   : > { %s132_s4 = sshll.u32 %s1722_s30, 4  ;;  %s144_s7 = sshll.u32 %s1969_s2, 4  ;;  %s133_s4 = int_to_ptr.vmem [resolvable:$true] %s132_s4  ;;  %s145_s7 = int_to_ptr.hbm [resolvable:$true] %s144_s7 }
  0x14   : > { %p1468_p0 = pnand %p1467_p1, %p1971_p4  ;;  %s1723_s8 = smov 64  }
  0x15   : > { %s1724_s9 = smov 4   ;;  %s1725_s10 = smov [#allocation7]  }
  0x16   : > { %1470 = dma.hbm_to_vmem [thread:$0]  (!%p1468_p0), %s131_s29, 8192, %s133_s4, [#allocation6], %s1723_s8, %s1723_s8, %s1724_s9  }
  0x17   : > { %s146_s11 = sshll.u32 %s1725_s10, 4  ;;  %s1726_s17 = smov 16   ;;  %s147_s11 = int_to_ptr.vmem [resolvable:$true] %s146_s11 }
  0x18   : > { %s1727_s19 = smov 1   ;;  %p1113_p2 = scmp.ge.s32.totalorder %s1720_s15, 3 }
  0x19   : > { %1473 = dma.hbm_to_vmem [thread:$0]  (!%p1468_p0), %s145_s7, 128, %s147_s11, [#allocation6], %s1726_s17, %s1726_s17, %s1727_s19  }
  0x1a   : > { %156 = sbr.rel (%p1113_p2) target bundleno = 67 (0x43), region = 24 }
  0x1f   : > { %159 = sbr.rel (!%p1794_p5) target bundleno = 67 (0x43), region = 28  ;;  %s160_s20 = sand.u32 (%p1794_p5), 1, %s1716_s14  }
  0x20   : > { %s1115_s27 = sshll.u32 (%p1794_p5), %s1720_s15, 1  ;;  %s1114_s28 = sshll.u32 (%p1794_p5), %s160_s20, 4 }
  0x21   : > { %s166_s30 = ssub.s32 (%p1794_p5), 5, %s1115_s27  ;;  %s1837_s6 = scalar_lea.sflag (%p1794_p5), [#allocation3], %s160_s20 }
  0x22   : > { %p167_p3 = scmp.lt.s32.totalorder (%p1794_p5), %s166_s30, 2  ;;  %s164_s7 = scalar_lea.vmem (%p1794_p5), [#allocation2], %s1114_s28 }
  0x24   : > { %s1987_s30 = smov (!%p167_p3, %s166_s30), 2 }
  0x25   : > { %s1116_s29 = sshll.u32 %s1987_s30, 3 }
  0x26   : > { %s170_s4 = ssub.s32 16, %s1116_s29 }
  0x27   : > { %s171_s5 = sshll.u32 %s170_s4, 4 }
  0x28   : > { %172 = vsyncadd %s1837_s6, %s171_s5  ;;  %p1840_p5 = scmp.ne.s32.totalorder %s1116_s29, 0  ;;  %s1391_s8 = sshll.u32 %s1720_s15, 4 }
  0x29   : > { %s175_s11 = scalar_lea.hbm %s1967_s0, %s1391_s8  ;;  %s1848_s17 = sshll.u32 %s164_s7, 4  ;;  %s180_s17 = int_to_ptr.vmem [resolvable:$true] %s1848_s17 }
  0x2a   : > { %s177_s19 = sshll.u32 %s175_s11, 4  ;;  %s1120_s20 = sshll.u32 %s1987_s30, 7  ;;  %s1851_s19 = int_to_ptr.hbm [resolvable:$true] %s177_s19 }
  0x2b   : > { %s1600_s27 = sshra.s32 %s1851_s19, 4  ;;  %s1602_s28 = sshrl.u32 %s1120_s20, 4  ;;  %s1601_s27 = int_to_ptr.hbm [resolvable:$true] %s1600_s27 }
  0x2c   : > { %s1607_s29 = scalar_lea.hbm %s1601_s27, %s1602_s28  ;;  %s1611_s7 = scalar_lea.hbm %s1967_s0, 40 }
  0x2d   : > { %p1608_p7 = scmp.ne.s32.totalorder %s1601_s27, %s1607_s29  ;;  %p1612_p10 = scmp.lt.s32.totalorder %s1601_s27, %s1967_s0 }
  0x2e   : > { %p1613_p1 = scmp.lt.s32.totalorder %s1611_s7, %s1607_s29 }
  0x2f   : > { %p1609_p8 = pnand %p1608_p7, %p1840_p5 }
  0x30   : > { %p1614_p0 = por %p1613_p1, %p1612_p10 }
  0x31   : > { %p1610_p9 = pneg %p1609_p8 }
  0x33   : > { %p1615_p2 = pnand %p1614_p0, %p1610_p9 }
  0x35   : > { %1618 = shalt.err (!%p1615_p2)
}
  0x36   : > { %s1619_s10 = sshra.s32 %s180_s17, 4  ;;  %s1728_s4 = smov [#allocation2]   ;;  %s1620_s10 = int_to_ptr.vmem [resolvable:$true] %s1619_s10 }
  0x37   : > { %s1626_s11 = scalar_lea.vmem %s1620_s10, %s1602_s28  ;;  %s1630_s5 = scalar_lea.vmem %s1728_s4, 32 }
  0x38   : > { %p1627_p3 = scmp.ne.s32.totalorder %s1620_s10, %s1626_s11  ;;  %p1632_p4 = scmp.lt.s32.totalorder %s1630_s5, %s1626_s11 }
  0x3a   : > { %p1628_p7 = pnand %p1627_p3, %p1840_p5 }
  0x3c   : > { %p1629_p8 = pneg %p1628_p7 }
  0x3e   : > { %p1634_p12 = pnand %p1632_p4, %p1629_p8 }
  0x40   : > { %1637 = shalt.err (!%p1634_p12)
}
  0x41   : > { %s1729_s27 = smov 128   ;;  %s1730_s29 = smov 8  }
  0x42   : > { %185 = dma.hbm_to_vmem [thread:$0]  (%p1840_p5), %s1851_s19, %s1120_s20, %s180_s17, %s1837_s6, %s1729_s27, %s1729_s27, %s1730_s29  }
  0x43 PF: > { %191 = sbr.rel (%p1815_p13) target bundleno = 1419 (0x58b), region = 32  ;;  %s1880_s28 = sand.u32 (!%p1815_p13), 1, %s1712_s13  }
  0x44   : > { %s1122_s7 = sshll.u32 (!%p1815_p13), %s1880_s28, 4  ;;  %s194_s8 = scalar_lea.sflag (!%p1815_p13), [#allocation3], %s1880_s28 }
  0x45   : > { %s197_s9 = scalar_lea.vmem (!%p1815_p13), [#allocation2], %s1122_s7 }
  0x48   : > { %1695 = dma.done.wait (%p1800_p6), %s194_s8, 256  }
  0x49   : > { %1697 = vsyncadd (%p1800_p6), %s194_s8, 4294967040  ;;  %p1978_p4 = scmp.eq.s32.totalorder %s1776_s16, 0 }
  0x4b   : > { %1699 = dma.done.wait (%p1978_p4), [#allocation6], 8320   ;;  %p1979_p12 = pmov %p1978_p4 }
  0x4c   : > { %v1894_v0 = vld [vmem:[%s197_s9] sm:$0xff]  ;;  %v1898_v2 = vld [vmem:[%s197_s9 + $0x8] sm:$0xff]  ;;  %v1731_v5 = vmov 128.0   ;;  %s230_s23 = scalar_lea.vmem [#allocation8], %s1122_s7  ;;  %s995_s26 = scalar_lea.sflag [#allocation4], %s1880_s28 }
  0x4d   : > { %1701 = vsyncadd (%p1979_p12), [#allocation6], 4294958976  ;;  %v243_v1 = vmul.f32 %v1894_v0, %v1894_v0  ;;  %v244_v3 = vmul.f32 %v1898_v2, %v1898_v2  ;;  %v1399_v4 = vld [vmem:[#allocation5 + $0x38] sm:$0xff]  ;;  %1534 = vrcp.f32 %v1731_v5  ;;  %v1398_v6 = vld [vmem:[#allocation5 + $0x30] sm:$0xff]  ;;  %s1383_s30 = sshll.u32 (%p1807_p11), %s1776_s16, 1 }
  0x4e   : > { %351 = vmatpush.bf16.msra.mxu0 %v1399_v4  ;;  %v1397_v7 = vld [vmem:[#allocation5 + $0x28] sm:$0xff]  ;;  %v1396_v10 = vld [vmem:[#allocation5 + $0x20] sm:$0xff]  ;;  %v1395_v12 = vld [vmem:[#allocation5 + $0x18] sm:$0xff]  ;;  %s1003_s6 = ssub.s32 (%p1807_p11), 5, %s1383_s30 }
  0x4f   : > { %245 = vadd.xlane.f32.xlu0 %v243_v1  ;;  %v1394_v14 = vld [vmem:[#allocation5 + $0x10] sm:$0xff]  ;;  %v1393_v16 = vld [vmem:[#allocation5 + $0x8] sm:$0xff]  ;;  %v1392_v17 = vld [vmem:[#allocation5] sm:$0xff]  ;;  %p1004_p6 = scmp.lt.s32.totalorder (%p1807_p11), %s1003_s6, 2 }
  0x50   : > { %v1407_v22 = vld [vmem:[#allocation5 + $0x78] sm:$0xff]  ;;  %v1406_v23 = vld [vmem:[#allocation5 + $0x70] sm:$0xff]  ;;  %v1405_v26 = vld [vmem:[#allocation5 + $0x68] sm:$0xff] }
  0x51   : > { %440 = vmatpush.bf16.msra.mxu1 %v1407_v22  ;;  %v1404_v30 = vld [vmem:[#allocation5 + $0x60] sm:$0xff]  ;;  %v1403_v46 = vld [vmem:[#allocation5 + $0x58] sm:$0xff]  ;;  %v1402_v47 = vld [vmem:[#allocation5 + $0x50] sm:$0xff] }
  0x52   : > { %352 = vmatpush.bf16.msra.mxu0 %v1398_v6  ;;  %v1401_v48 = vld [vmem:[#allocation5 + $0x48] sm:$0xff]  ;;  %v1400_v49 = vld [vmem:[#allocation5 + $0x40] sm:$0xff]  ;;  %v1415_v50 = vld [vmem:[#allocation5 + $0xb8] sm:$0xff] }
  0x53   : > { %v1535_v8 = vpop.eup %1534  ;;  %529 = vmatpush.bf16.msra.mxu2 %v1415_v50  ;;  %v1414_v51 = vld [vmem:[#allocation5 + $0xb0] sm:$0xff]  ;;  %v1413_v52 = vld [vmem:[#allocation5 + $0xa8] sm:$0xff]  ;;  %v1412_v53 = vld [vmem:[#allocation5 + $0xa0] sm:$0xff] }
  0x54   : > { %v250_v9 = vmul.f32 128.0, %v1535_v8  ;;  %vm254_vm0 = vweird.f32 %v1535_v8  ;;  %v1526_v55 = vld [vmem:[#allocation7] ss:$0 sm:$0xff]  ;;  %v1410_v1 = vld [vmem:[#allocation5 + $0x90] sm:$0xff]  ;;  %v1423_v4 = vld [vmem:[#allocation5 + $0xf8] sm:$0xff] }
  0x55   : > { %441 = vmatpush.bf16.msra.mxu1 %v1406_v23  ;;  %618 = vmatpush.bf16.msra.mxu3 %v1423_v4  ;;  %v1422_v5 = vld [vmem:[#allocation5 + $0xf0] sm:$0xff]  ;;  %v1421_v6 = vld [vmem:[#allocation5 + $0xe8] sm:$0xff]  ;;  %v1431_v22 = vld [vmem:[#allocation5 + $0x138] sm:$0xff] }
  0x56   : > { %353 = vmatpush.bf16.msra.mxu0 %v1397_v7  ;;  %v251_v11 = vsub.f32 1.0, %v250_v9  ;;  %v1420_v7 = vld [vmem:[#allocation5 + $0xe0] sm:$0xff]  ;;  %v1430_v23 = vld [vmem:[#allocation5 + $0x130] sm:$0xff] }
  0x57   : > { %247 = vadd.xlane.f32.xlu0 %v244_v3  ;;  %530 = vmatpush.bf16.msra.mxu2 %v1414_v51  ;;  %v1408_v3 = vld [vmem:[#allocation5 + $0x80] sm:$0xff] }
  0x58   : > { %v252_v13 = vmul.f32 %v1535_v8, %v251_v11  ;;  %v1527_v9 = vld [vmem:[#allocation7 + $0x1] ss:$0 sm:$0xff] }
  0x59   : > { %442 = vmatpush.bf16.msra.mxu1 %v1405_v26  ;;  %619 = vmatpush.bf16.msra.mxu3 %v1422_v5 }
  0x5a   : > { %354 = vmatpush.bf16.msra.mxu0 %v1396_v10  ;;  %v253_v15 = vadd.f32 %v1535_v8, %v252_v13 }
  0x5b   : > { %531 = vmatpush.bf16.msra.mxu2 %v1413_v52 }
  0x5c   : > { %v255_v18 = vsel %vm254_vm0, %v1535_v8, %v253_v15 }
  0x5d   : > { %443 = vmatpush.bf16.msra.mxu1 %v1404_v30  ;;  %620 = vmatpush.bf16.msra.mxu3 %v1421_v6 }
  0x5e   : > { %355 = vmatpush.bf16.msra.mxu0 %v1395_v12 }
  0x5f   : > { %532 = vmatpush.bf16.msra.mxu2 %v1412_v53 }
  0x61   : > { %444 = vmatpush.bf16.msra.mxu1 %v1403_v46  ;;  %621 = vmatpush.bf16.msra.mxu3 %v1420_v7 }
  0x62   : > { %356 = vmatpush.bf16.msra.mxu0 %v1394_v14 }
  0x65   : > { %445 = vmatpush.bf16.msra.mxu1 %v1402_v47 }
  0x66   : > { %357 = vmatpush.bf16.msra.mxu0 %v1393_v16 }
  0x69   : > { %446 = vmatpush.bf16.msra.mxu1 %v1401_v48 }
  0x6a   : > { %358 = vmatpush.bf16.msra.mxu0 %v1392_v17 }
  0x6d   : > { %447 = vmatpush.bf16.msra.mxu1 %v1400_v49 }
  0x6e   : > { %707 = vmatpush.bf16.msrb.mxu0 %v1431_v22 }
  0x72   : > { %708 = vmatpush.bf16.msrb.mxu0 %v1430_v23 }
  0xc2   : > { %v246_v19 = vpop.xlane.xlu0 %245 }
  0xc3   : > { %v256_v20 = vmul.f32 %v255_v18, %v246_v19  ;;  %v1418_v19 = vld [vmem:[#allocation5 + $0xd0] sm:$0xff] }
  0xc5   : > { %v258_v21 = vadd.f32 1e-08, %v256_v20  ;;  %v1417_v20 = vld [vmem:[#allocation5 + $0xc8] sm:$0xff] }
  0xc7   : > { %1536 = vrsqrt.f32 %v258_v21  ;;  %vm266_vm2 = vweird.f32 %v258_v21 }
  0xca   : > { %v248_v24 = vpop.xlane.xlu0 %247 }
  0xcb   : > { %v257_v25 = vmul.f32 %v255_v18, %v248_v24  ;;  %v1419_v18 = vld [vmem:[#allocation5 + $0xd8] sm:$0xff]  ;;  %v1429_v24 = vld [vmem:[#allocation5 + $0x128] sm:$0xff] }
  0xcc   : > { %622 = vmatpush.bf16.msra.mxu3 %v1419_v18  ;;  %709 = vmatpush.bf16.msrb.mxu0 %v1429_v24 }
  0xcd   : > { %v1537_v27 = vpop.eup %1536  ;;  %v259_v28 = vadd.f32 1e-08, %v257_v25  ;;  %v1428_v25 = vld [vmem:[#allocation5 + $0x120] sm:$0xff] }
  0xce   : > { %v261_v29 = vmul.f32 %v1537_v27, %v258_v21  ;;  %vm267_vm1 = vweird.f32 %v1537_v27  ;;  %v1416_v21 = vld [vmem:[#allocation5 + $0xc0] sm:$0xff] }
  0xcf   : > { %1538 = vrsqrt.f32 %v259_v28  ;;  %vm268_vm4 = vmor %vm266_vm2, %vm267_vm1  ;;  %vm276_vm5 = vweird.f32 %v259_v28 }
  0xd0   : > { %v262_v31 = vmul.f32 %v1537_v27, %v261_v29  ;;  %623 = vmatpush.bf16.msra.mxu3 %v1418_v19  ;;  %710 = vmatpush.bf16.msrb.mxu0 %v1428_v25 }
  0xd2   : > { %v263_v32 = vmul.f32 0.5, %v262_v31 }
  0xd4   : > { %v264_v34 = vsub.f32 1.5, %v263_v32  ;;  %624 = vmatpush.bf16.msra.mxu3 %v1417_v20 }
  0xd5   : > { %v1539_v33 = vpop.eup %1538 }
  0xd6   : > { %v271_v35 = vmul.f32 %v1539_v33, %v259_v28  ;;  %v265_v38 = vmul.f32 %v1537_v27, %v264_v34  ;;  %vm277_vm3 = vweird.f32 %v1539_v33 }
  0xd7   : > { %vm278_vm6 = vmor %vm276_vm5, %vm277_vm3 }
  0xd8   : > { %v272_v36 = vmul.f32 %v1539_v33, %v271_v35  ;;  %v269_v40 = vsel %vm268_vm4, %v1537_v27, %v265_v38  ;;  %625 = vmatpush.bf16.msra.mxu3 %v1416_v21  ;;  %v1528_v27 = vld [vmem:[#allocation7 + $0x2] ss:$0 sm:$0xff]  ;;  %v1425_v38 = vld [vmem:[#allocation5 + $0x108] sm:$0xff] }
  0xd9   : > { %v280_v43 = vmul.f32 %v269_v40, %v1894_v0  ;;  %v1411_v0 = vld [vmem:[#allocation5 + $0x98] sm:$0xff] }
  0xda   : > { %v273_v37 = vmul.f32 0.5, %v272_v36  ;;  %533 = vmatpush.bf16.msra.mxu2 %v1411_v0  ;;  %v1427_v36 = vld [vmem:[#allocation5 + $0x118] sm:$0xff] }
  0xdb   : > { %711 = vmatpush.bf16.msrb.mxu0 %v1427_v36  ;;  %v1439_v40 = vld [vmem:[#allocation5 + $0x178] sm:$0xff] }
  0xdc   : > { %v274_v39 = vsub.f32 1.5, %v273_v37  ;;  %v1426_v37 = vld [vmem:[#allocation5 + $0x110] sm:$0xff]  ;;  %796 = vmatpush.bf16.msrb.mxu1 %v1439_v40  ;;  %v1533_v40 = vld [vmem:[#allocation7 + $0x7] ss:$0 sm:$0xff] }
  0xde   : > { %v275_v41 = vmul.f32 %v1539_v33, %v274_v39  ;;  %534 = vmatpush.bf16.msra.mxu2 %v1410_v1  ;;  %v1424_v39 = vld [vmem:[#allocation5 + $0x100] sm:$0xff] }
  0xdf   : > { %712 = vmatpush.bf16.msrb.mxu0 %v1426_v37 }
  0xe0   : > { %v279_v42 = vsel %vm278_vm6, %v1539_v33, %v275_v41  ;;  %v1438_v41 = vld [vmem:[#allocation5 + $0x170] sm:$0xff] }
  0xe1   : > { %v281_v44 = vmul.f32 %v279_v42, %v1898_v2  ;;  %v1409_v2 = vld [vmem:[#allocation5 + $0x88] sm:$0xff]  ;;  %797 = vmatpush.bf16.msrb.mxu1 %v1438_v41 }
  0xe2   : > { %535 = vmatpush.bf16.msra.mxu2 %v1409_v2  ;;  %v1437_v42 = vld [vmem:[#allocation5 + $0x168] sm:$0xff] }
  0xe3   : > { %v282_v45 = vpack.c.bf16 %v281_v44, %v280_v43  ;;  %713 = vmatpush.bf16.msrb.mxu0 %v1425_v38  ;;  %v1436_v43 = vld [vmem:[#allocation5 + $0x160] sm:$0xff] }
  0xe5   : > { %359 = vmatmul.bf16.vlgmr.msra.gmra.mxu0 %v282_v45  ;;  %798 = vmatpush.bf16.msrb.mxu1 %v1437_v42  ;;  %v1529_v45 = vld [vmem:[#allocation7 + $0x3] ss:$0 sm:$0xff] }
  0xe6   : > { %536 = vmatpush.bf16.msra.mxu2 %v1408_v3 }
  0xe7   : > { %714 = vmatpush.bf16.msrb.mxu0 %v1424_v39 }
  0xe9   : > { %799 = vmatpush.bf16.msrb.mxu1 %v1436_v43 }
 0x162   : > { %v360_v54 = vpop.f32.mrf.mxu0 }
 0x163   : > { %v361_v56 = vadd.f32 %v1526_v55, %v360_v54  ;;  %v1435_v54 = vld [vmem:[#allocation5 + $0x158] sm:$0xff] }
 0x164   : > { %800 = vmatpush.bf16.msrb.mxu1 %v1435_v54 }
 0x165   : > { %v365_v58 = vmul.f32 0.2, %v361_v56 }
 0x167   : > { %v367_v61 = vmax.f32 %v361_v56, %v365_v58  ;;  %v1433_v56 = vld [vmem:[#allocation5 + $0x148] sm:$0xff]  ;;  %v1447_v58 = vld [vmem:[#allocation5 + $0x1b8] sm:$0xff] }
 0x168   : > { %885 = vmatpush.bf16.msrb.mxu2 %v1447_v58 }
 0x16a   : > { %v362_v57 = vpop.f32.mrf.mxu0 }
 0x16b   : > { %v363_v59 = vadd.f32 %v1526_v55, %v362_v57  ;;  %v1434_v55 = vld [vmem:[#allocation5 + $0x150] sm:$0xff]  ;;  %v1432_v57 = vld [vmem:[#allocation5 + $0x140] sm:$0xff] }
 0x16c   : > { %801 = vmatpush.bf16.msrb.mxu1 %v1434_v55 }
 0x16d   : > { %v366_v60 = vmul.f32 0.2, %v363_v59 }
 0x16f   : > { %v368_v62 = vmax.f32 %v363_v59, %v366_v60  ;;  %v1446_v59 = vld [vmem:[#allocation5 + $0x1b0] sm:$0xff]  ;;  %v1445_v60 = vld [vmem:[#allocation5 + $0x1a8] sm:$0xff] }
 0x170   : > { %802 = vmatpush.bf16.msrb.mxu1 %v1433_v56  ;;  %886 = vmatpush.bf16.msrb.mxu2 %v1446_v59 }
 0x171   : > { %v369_v63 = vpack.c.bf16 %v368_v62, %v367_v61  ;;  %v1444_v61 = vld [vmem:[#allocation5 + $0x1a0] sm:$0xff] }
 0x173   : > { %448 = vmatmul.bf16.vlgmr.msra.gmra.mxu1 %v369_v63  ;;  %v1530_v63 = vld [vmem:[#allocation7 + $0x4] ss:$0 sm:$0xff] }
 0x174   : > { %803 = vmatpush.bf16.msrb.mxu1 %v1432_v57  ;;  %887 = vmatpush.bf16.msrb.mxu2 %v1445_v60 }
 0x178   : > { %888 = vmatpush.bf16.msrb.mxu2 %v1444_v61 }
 0x1f0   : > { %v449_v8 = vpop.f32.mrf.mxu1 }
 0x1f1   : > { %v450_v10 = vadd.f32 %v1527_v9, %v449_v8  ;;  %v1443_v8 = vld [vmem:[#allocation5 + $0x198] sm:$0xff] }
 0x1f2   : > { %889 = vmatpush.bf16.msrb.mxu2 %v1443_v8 }
 0x1f3   : > { %v454_v12 = vmul.f32 0.2, %v450_v10 }
 0x1f5   : > { %v456_v15 = vmax.f32 %v450_v10, %v454_v12  ;;  %v1441_v10 = vld [vmem:[#allocation5 + $0x188] sm:$0xff]  ;;  %v1455_v12 = vld [vmem:[#allocation5 + $0x1f8] sm:$0xff] }
 0x1f6   : > { %974 = vmatpush.bf16.msrb.mxu3 %v1455_v12 }
 0x1f8   : > { %v451_v11 = vpop.f32.mrf.mxu1 }
 0x1f9   : > { %v452_v13 = vadd.f32 %v1527_v9, %v451_v11  ;;  %v1442_v9 = vld [vmem:[#allocation5 + $0x190] sm:$0xff]  ;;  %v1440_v11 = vld [vmem:[#allocation5 + $0x180] sm:$0xff] }
 0x1fa   : > { %890 = vmatpush.bf16.msrb.mxu2 %v1442_v9 }
 0x1fb   : > { %v455_v14 = vmul.f32 0.2, %v452_v13 }
 0x1fd   : > { %v457_v16 = vmax.f32 %v452_v13, %v455_v14  ;;  %v1454_v13 = vld [vmem:[#allocation5 + $0x1f0] sm:$0xff]  ;;  %v1453_v14 = vld [vmem:[#allocation5 + $0x1e8] sm:$0xff] }
 0x1fe   : > { %891 = vmatpush.bf16.msrb.mxu2 %v1441_v10  ;;  %975 = vmatpush.bf16.msrb.mxu3 %v1454_v13 }
 0x1ff   : > { %v458_v17 = vpack.c.bf16 %v457_v16, %v456_v15  ;;  %v1452_v15 = vld [vmem:[#allocation5 + $0x1e0] sm:$0xff] }
 0x201   : > { %537 = vmatmul.bf16.vlgmr.msra.gmra.mxu2 %v458_v17  ;;  %v1531_v17 = vld [vmem:[#allocation7 + $0x5] ss:$0 sm:$0xff] }
 0x202   : > { %892 = vmatpush.bf16.msrb.mxu2 %v1440_v11  ;;  %976 = vmatpush.bf16.msrb.mxu3 %v1453_v14 }
 0x206   : > { %977 = vmatpush.bf16.msrb.mxu3 %v1452_v15 }
 0x284   : > { %v538_v26 = vpop.f32.mrf.mxu2 }
 0x285   : > { %v539_v28 = vadd.f32 %v1528_v27, %v538_v26  ;;  %v1451_v26 = vld [vmem:[#allocation5 + $0x1d8] sm:$0xff] }
 0x286   : > { %978 = vmatpush.bf16.msrb.mxu3 %v1451_v26 }
 0x287   : > { %v543_v30 = vmul.f32 0.2, %v539_v28 }
 0x289   : > { %v545_v33 = vmax.f32 %v539_v28, %v543_v30  ;;  %v1449_v28 = vld [vmem:[#allocation5 + $0x1c8] sm:$0xff] }
 0x28c   : > { %v540_v29 = vpop.f32.mrf.mxu2 }
 0x28d   : > { %v541_v31 = vadd.f32 %v1528_v27, %v540_v29  ;;  %v1450_v27 = vld [vmem:[#allocation5 + $0x1d0] sm:$0xff]  ;;  %v1448_v29 = vld [vmem:[#allocation5 + $0x1c0] sm:$0xff] }
 0x28e   : > { %979 = vmatpush.bf16.msrb.mxu3 %v1450_v27 }
 0x28f   : > { %v544_v32 = vmul.f32 0.2, %v541_v31 }
 0x291   : > { %v546_v34 = vmax.f32 %v541_v31, %v544_v32  ;;  %v1532_v31 = vld [vmem:[#allocation7 + $0x6] ss:$0 sm:$0xff] }
 0x292   : > { %980 = vmatpush.bf16.msrb.mxu3 %v1449_v28 }
 0x293   : > { %v547_v35 = vpack.c.bf16 %v546_v34, %v545_v33 }
 0x295   : > { %626 = vmatmul.bf16.vlgmr.msra.gmra.mxu3 %v547_v35 }
 0x296   : > { %981 = vmatpush.bf16.msrb.mxu3 %v1448_v29 }
 0x318   : > { %v627_v44 = vpop.f32.mrf.mxu3 }
 0x319   : > { %v628_v46 = vadd.f32 %v1529_v45, %v627_v44 }
 0x31b   : > { %v632_v48 = vmul.f32 0.2, %v628_v46 }
 0x31d   : > { %v634_v51 = vmax.f32 %v628_v46, %v632_v48 }
 0x320   : > { %v629_v47 = vpop.f32.mrf.mxu3 }
 0x321   : > { %v630_v49 = vadd.f32 %v1529_v45, %v629_v47 }
 0x323   : > { %v633_v50 = vmul.f32 0.2, %v630_v49 }
 0x325   : > { %v635_v52 = vmax.f32 %v630_v49, %v633_v50 }
 0x327   : > { %v636_v53 = vpack.c.bf16 %v635_v52, %v634_v51 }
 0x329   : > { %715 = vmatmul.bf16.vlgmr.msrb.gmra.mxu0 %v636_v53 }
 0x3a6   : > { %v716_v62 = vpop.f32.mrf.mxu0 }
 0x3a7   : > { %v717_v0 = vadd.f32 %v1530_v63, %v716_v62 }
 0x3a9   : > { %v721_v2 = vmul.f32 0.2, %v717_v0 }
 0x3ab   : > { %v723_v5 = vmax.f32 %v717_v0, %v721_v2 }
 0x3ae   : > { %v718_v1 = vpop.f32.mrf.mxu0 }
 0x3af   : > { %v719_v3 = vadd.f32 %v1530_v63, %v718_v1 }
 0x3b1   : > { %v722_v4 = vmul.f32 0.2, %v719_v3 }
 0x3b3   : > { %v724_v6 = vmax.f32 %v719_v3, %v722_v4 }
 0x3b5   : > { %v725_v7 = vpack.c.bf16 %v724_v6, %v723_v5 }
 0x3b7   : > { %804 = vmatmul.bf16.vlgmr.msrb.gmra.mxu1 %v725_v7 }
 0x434   : > { %v805_v16 = vpop.f32.mrf.mxu1 }
 0x435   : > { %v806_v18 = vadd.f32 %v1531_v17, %v805_v16 }
 0x437   : > { %v810_v20 = vmul.f32 0.2, %v806_v18 }
 0x439   : > { %v812_v23 = vmax.f32 %v806_v18, %v810_v20 }
 0x43c   : > { %v807_v19 = vpop.f32.mrf.mxu1 }
 0x43d   : > { %v808_v21 = vadd.f32 %v1531_v17, %v807_v19 }
 0x43f   : > { %v811_v22 = vmul.f32 0.2, %v808_v21 }
 0x441   : > { %v813_v24 = vmax.f32 %v808_v21, %v811_v22 }
 0x443   : > { %v814_v25 = vpack.c.bf16 %v813_v24, %v812_v23 }
 0x445   : > { %893 = vmatmul.bf16.vlgmr.msrb.gmra.mxu2 %v814_v25 }
 0x4c8   : > { %v894_v30 = vpop.f32.mrf.mxu2 }
 0x4c9   : > { %v895_v32 = vadd.f32 %v1532_v31, %v894_v30 }
 0x4cb   : > { %v899_v34 = vmul.f32 0.2, %v895_v32 }
 0x4cd   : > { %v901_v37 = vmax.f32 %v895_v32, %v899_v34 }
 0x4d0   : > { %v896_v33 = vpop.f32.mrf.mxu2 }
 0x4d1   : > { %v897_v35 = vadd.f32 %v1532_v31, %v896_v33 }
 0x4d3   : > { %v900_v36 = vmul.f32 0.2, %v897_v35 }
 0x4d5   : > { %v902_v38 = vmax.f32 %v897_v35, %v900_v36 }
 0x4d7   : > { %v903_v39 = vpack.c.bf16 %v902_v38, %v901_v37 }
 0x4d9   : > { %982 = vmatmul.bf16.vlgmr.msrb.gmra.mxu3 %v903_v39 }
 0x55c   : > { %v983_v41 = vpop.f32.mrf.mxu3 }
 0x55d   : > { %v984_v42 = vadd.f32 %v1533_v40, %v983_v41 }
 0x55f   : > { %v988_v43 = vmul.f32 0.2, %v984_v42 }
 0x561   : > { %v990_v44 = vmax.f32 %v984_v42, %v988_v43 }
 0x563   : > { %992 = vst [vmem:[%s230_s23] sm:$0xff] %v990_v44 }
 0x564   : > { %v985_v45 = vpop.f32.mrf.mxu3 }
 0x565   : > { %v986_v46 = vadd.f32 %v1533_v40, %v985_v45 }
 0x567   : > { %v989_v47 = vmul.f32 0.2, %v986_v46  ;;  %1001 = sbr.rel (!%p1807_p11) target bundleno = 1419 (0x58b), region = 48 }
 0x569   : > { %v991_v48 = vmax.f32 %v986_v46, %v989_v47 }
 0x56b   : > { %993 = vst [vmem:[%s230_s23 + $0x8] sm:$0xff] %v991_v48 }
 0x56c   : > { %s1989_s6 = smov (!%p1004_p6, %s1003_s6), 2 }
 0x56d   : > { %s1384_s22 = sshll.u32 %s1989_s6, 3 }
 0x56e   : > { %s1007_s17 = ssub.s32 16, %s1384_s22 }
 0x56f   : > { %s1008_s19 = sshll.u32 %s1007_s17, 4 }
 0x570   : > { %1009 = vsyncadd %s995_s26, %s1008_s19  ;;  %p1915_p13 = scmp.ne.s32.totalorder %s1384_s22, 0  ;;  %s1456_s24 = sshll.u32 %s1776_s16, 4 }
 0x571   : > { %s1012_s4 = scalar_lea.hbm %s1970_s3, %s1456_s24  ;;  %s1014_s5 = sshll.u32 %s230_s23, 4  ;;  %s1923_s5 = int_to_ptr.vmem [resolvable:$true] %s1014_s5 }
 0x572   : > { %s1016_s27 = sshll.u32 %s1012_s4, 4  ;;  %s1388_s29 = sshll.u32 %s1989_s6, 7  ;;  %s1925_s27 = int_to_ptr.hbm [resolvable:$true] %s1016_s27 }
 0x573   : > { %s1639_s7 = sshra.s32 %s1923_s5, 4  ;;  %s1641_s8 = sshrl.u32 %s1388_s29, 4  ;;  %s1640_s7 = int_to_ptr.vmem [resolvable:$true] %s1639_s7 }
 0x574   : > { %s1646_s9 = scalar_lea.vmem %s1640_s7, %s1641_s8  ;;  %s1732_s16 = smov [#allocation8]  }
 0x575   : > { %p1647_p11 = scmp.ne.s32.totalorder %s1640_s7, %s1646_s9  ;;  %s1650_s30 = scalar_lea.vmem %s1732_s16, 32 }
 0x576   : > { %p1652_p10 = scmp.lt.s32.totalorder %s1650_s30, %s1646_s9 }
 0x577   : > { %p1648_p5 = pnand %p1647_p11, %p1915_p13 }
 0x579   : > { %p1649_p9 = pneg %p1648_p5 }
 0x57b   : > { %p1654_p1 = pnand %p1652_p10, %p1649_p9 }
 0x57d   : > { %1657 = shalt.err (!%p1654_p1)
}
 0x57e   : > { %s1658_s23 = sshra.s32 %s1925_s27, 4  ;;  %s1669_s24 = scalar_lea.hbm %s1970_s3, 40  ;;  %s1659_s23 = int_to_ptr.hbm [resolvable:$true] %s1658_s23 }
 0x57f   : > { %s1665_s22 = scalar_lea.hbm %s1659_s23, %s1641_s8  ;;  %p1670_p7 = scmp.lt.s32.totalorder %s1659_s23, %s1970_s3 }
 0x580   : > { %p1666_p0 = scmp.ne.s32.totalorder %s1659_s23, %s1665_s22  ;;  %p1671_p8 = scmp.lt.s32.totalorder %s1669_s24, %s1665_s22 }
 0x582   : > { %p1667_p2 = pnand %p1666_p0, %p1915_p13  ;;  %p1672_p4 = por %p1671_p8, %p1670_p7 }
 0x584   : > { %p1668_p3 = pneg %p1667_p2 }
 0x586   : > { %p1673_p12 = pnand %p1672_p4, %p1668_p3 }
 0x588   : > { %1676 = shalt.err (!%p1673_p12)
}
 0x589   : > { %s1733_s4 = smov 128   ;;  %s1734_s7 = smov 8  }
 0x58a   : > { %1022 = dma.vmem_to_hbm [thread:$0]  (%p1915_p13), %s1923_s5, %s1388_s29, %s1925_s27, %s995_s26, %s1733_s4, %s1733_s4, %s1734_s7  }
 0x58b PF: > { %p1482_p6 = scmp.ge.s32.totalorder %s1720_s15, 2  ;;  %s1031_s8 = sand.u32 1, %s1708_s12  }
 0x58c   : > { %p1981_p11 = scmp.ne.s32.totalorder %s1975_s25, 0  ;;  %s1032_s9 = scalar_lea.sflag [#allocation4], %s1031_s8 }
 0x58e   : > { %p1475_p5 = pnand %p1482_p6, %p1981_p11 }
 0x590   : > { %p1476_p9 = pneg %p1475_p5 }
 0x592   : > { %1703 = dma.done.wait (%p1476_p9), %s1032_s9, 256  }
 0x593   : > { %1705 = vsyncadd (%p1476_p9), %s1032_s9, 4294967040  ;;  %p17_p10 = scmp.ge.s32.totalorder %s1780_s18, 5   ;;  %s1982_s12 = smov %s1712_s13 }
 0x594   : > { %s1983_s13 = smov %s1716_s14  ;;  %s1984_s14 = smov %s1792_s21 }
 0x595   : > { %s1985_s15 = smov %s1780_s18  ;;  %19 = sbr.rel (!%p17_p10) target bundleno = 6 (0x6), region = 99 }
 0x59a   :  { %1038 = vsyncpa [#allocation3], 1 }
 0x59b   :  { %1040 = vsyncpa [#allocation3 + $0x1], 1 }
 0x59c   :  { %1041 = vsyncpa [#allocation6], 1 }
 0x59d   :  { %1042 = vsyncpa [#allocation4], 1 }
 0x59e   :  { %1044 = vsyncpa [#allocation4 + $0x1], 1 }

</bundles_post_ra>
